<compile_context>
chip_gen: v6e
topology: v6e:2x2x1
jax: 0.10.0
libtpu: 0.0.40
codegen_flags: <defaults>
</compile_context>

<pallas_src>
import functools

import jax
import jax.numpy as jnp
from jax.experimental import pallas as pl
from jax.experimental.pallas import tpu as pltpu


def _diou_kernel(mn_ref, std_ref, mnl_ref, stdl_ref, pred_ref, label_ref,
                 out_ref, *, n: int, w: int, h: int):
    pred = pred_ref[...]          # (3, NP) lane-major: rows = [y_c, x_c, r]
    label = label_ref[...]        # (3, NP)
    np_ = pred.shape[1]

    def denorm(x, m_ref, s_ref):
        # Per-channel scalars come straight from SMEM and broadcast over lanes.
        cy = x[0:1, :] * s_ref[0] + m_ref[0]     # (1, NP)
        cx = x[1:2, :] * s_ref[1] + m_ref[1]
        r = x[2:3, :] * s_ref[2] + m_ref[2]
        return cy, cx, r

    cy_p, cx_p, r_p = denorm(pred, mn_ref, std_ref)
    cy_l, cx_l, r_l = denorm(label, mnl_ref, stdl_ref)

    def ranges(cy, cx, r):
        # torch clamps with max(., 0) / min(., w|h) then casts to long
        # (truncation toward zero; the lower bounds are non-negative).
        x_lo = jnp.maximum(cx - r, 0.0).astype(jnp.int32)
        x_up = jnp.minimum(cx + r, float(w)).astype(jnp.int32)
        y_lo = jnp.maximum(cy - r, 0.0).astype(jnp.int32)
        y_up = jnp.minimum(cy + r, float(h)).astype(jnp.int32)
        return x_lo, x_up, y_lo, y_up

    xp_lo, xp_up, yp_lo, yp_up = ranges(cy_p, cx_p, r_p)
    xl_lo, xl_up, yl_lo, yl_up = ranges(cy_l, cx_l, r_l)

    def inter_union(lo_a, up_a, lo_b, up_b):
        # Exact closed-form counts of the {0,1} interval masks: lo >= 0 and
        # up <= w|h after clamping, so no rasterization is needed.
        len_a = jnp.maximum(up_a - lo_a, 0)
        len_b = jnp.maximum(up_b - lo_b, 0)
        inter = jnp.maximum(
            jnp.minimum(up_a, up_b) - jnp.maximum(lo_a, lo_b), 0)
        union = len_a + len_b - inter
        return inter.astype(jnp.float32), union.astype(jnp.float32)

    inter_x, union_x = inter_union(xp_lo, xp_up, xl_lo, xl_up)   # (1, NP)
    inter_y, union_y = inter_union(yp_lo, yp_up, yl_lo, yl_up)   # (1, NP)

    # Zero the padded lanes (>= n) so they do not contaminate the cumsums.
    lane = jax.lax.broadcasted_iota(jnp.int32, (1, np_), 1)
    valid = lane < n
    zf = jnp.zeros((1, np_), jnp.float32)
    inter_x = jnp.where(valid, inter_x, zf)
    inter_y = jnp.where(valid, inter_y, zf)
    union_x = jnp.where(valid, union_x, zf)
    union_y = jnp.where(valid, union_y, zf)

    # The PyTorch loop sums the whole partially-filled mask tensors at every
    # iteration idx, i.e. it uses inclusive cumulative sums of the per-row
    # counts.  Compute all four cumsums with a single MXU matmul against an
    # upper-triangular (i <= j) matrix (column j = cumsum over samples 0..j).
    counts = jnp.concatenate(
        [inter_x, inter_y, union_x, union_y, zf, zf, zf, zf], axis=0)  # (8, NP)
    ri = jax.lax.broadcasted_iota(jnp.int32, (np_, np_), 0)
    rj = jax.lax.broadcasted_iota(jnp.int32, (np_, np_), 1)
    tri = jnp.where(ri <= rj, 1.0, 0.0).astype(jnp.float32)            # (NP, NP)
    cum = jnp.dot(counts, tri, preferred_element_type=jnp.float32)     # (8, NP)

    cix = cum[0:1, :]
    ciy = cum[1:2, :]
    cux = cum[2:3, :]
    cuy = cum[3:4, :]

    # Per-iteration IoU terms; reciprocal runs on the EUP slot.  Division by a
    # zero cumulative union keeps NaN parity with the torch implementation.
    terms = (cix * ciy) * pl.reciprocal(cux * cuy, approx=False)
    terms = jnp.where(valid, terms, zf)
    inv_n = 1.0 / float(n)
    iou = jnp.sum(terms, axis=1, keepdims=True) * inv_n                # (1, 1)

    # mean_i sum_d (pred - label)^2  (padded lanes are zero, but mask anyway).
    diff = pred - label
    sq = jnp.sum(diff * diff, axis=0, keepdims=True)                   # (1, NP)
    sq = jnp.where(valid, sq, zf)
    mse = jnp.sum(sq, axis=1, keepdims=True) * inv_n                   # (1, 1)

    diou = mse + (1.0 - iou)                                           # (1, 1)

    # Single (1, 2) output: [diou, iou].
    out_ref[0:1, 0:1] = diou
    out_ref[0:1, 1:2] = iou


def diou_loss(pred, label, mn, std, w, h, mn_label=None, std_label=None):
    """JAX/Pallas equivalent of DIOULOSS.forward. Returns (diou, iou) scalars."""
    assert w == h, "original module implicitly requires w == h for the y-masks"
    pred = jnp.asarray(pred, jnp.float32)
    label = jnp.asarray(label, jnp.float32)
    n = pred.shape[0]
    np_ = ((n + 127) // 128) * 128            # lane-align the sample axis

    # Lane-major, zero-padded layouts: (3, NP).
    pred_t = jnp.zeros((3, np_), jnp.float32).at[:, :n].set(pred.T)
    label_t = jnp.zeros((3, np_), jnp.float32).at[:, :n].set(label.T)

    mn1 = jnp.asarray(mn, jnp.float32).reshape(3)
    std1 = jnp.asarray(std, jnp.float32).reshape(3)
    mnl1 = mn1 if mn_label is None else jnp.asarray(mn_label, jnp.float32).reshape(3)
    stdl1 = std1 if std_label is None else jnp.asarray(std_label, jnp.float32).reshape(3)

    kernel = functools.partial(_diou_kernel, n=n, w=w, h=h)
    smem = pl.BlockSpec(memory_space=pltpu.MemorySpace.SMEM)
    vmem = pl.BlockSpec(memory_space=pltpu.MemorySpace.VMEM)
    out = pl.pallas_call(
        kernel,
        out_shape=jax.ShapeDtypeStruct((1, 2), jnp.float32),
        in_specs=[smem, smem, smem, smem, vmem, vmem],
        out_specs=vmem,
    )(mn1, std1, mnl1, stdl1, pred_t, label_t)
    return out[0, 0], out[0, 1]


if __name__ == "__main__":
    # Small deterministic example: N=8 samples, 3 circle params each, 16x16 grid.
    key = jax.random.PRNGKey(0)
    k1, k2 = jax.random.split(key)
    N, W, H = 8, 16, 16

    # Denormalization stats chosen so circles land inside the 16x16 frame
    # with non-empty intervals (mirrors the np.ndarray mn/std of __init__).
    mn = jnp.array([8.0, 8.0, 5.0], jnp.float32)     # [y_c, x_c, r] means
    std = jnp.array([1.5, 1.5, 0.75], jnp.float32)   # [y_c, x_c, r] stds

    pred = jax.random.normal(k1, (N, 3), jnp.float32)
    label = jax.random.normal(k2, (N, 3), jnp.float32)

    diou, iou = diou_loss(pred, label, mn, std, W, H)
    jax.block_until_ready((diou, iou))
    print("KERNEL_OK")
</pallas_src>

<mosaic_0001>
module attributes {stable_mosaic.version = 11 : i64} {
  func.func @_diou_kernel(%arg0: memref<3xf32, #tpu.memory_space<smem>>, %arg1: memref<3xf32, #tpu.memory_space<smem>>, %arg2: memref<3xf32, #tpu.memory_space<smem>>, %arg3: memref<3xf32, #tpu.memory_space<smem>>, %arg4: memref<3x128xf32, #tpu.memory_space<vmem>>, %arg5: memref<3x128xf32, #tpu.memory_space<vmem>>, %arg6: memref<1x2xf32, #tpu.memory_space<vmem>>) attributes {dimension_semantics = [], scalar_prefetch = 0 : i64, scratch_operands = 0 : i64, tpu.core_type = #tpu.core_type<tc>} {
    %c0 = arith.constant 0 : index
    %c0_0 = arith.constant 0 : index
    %0 = vector.load %arg4[%c0, %c0_0] : memref<3x128xf32, #tpu.memory_space<vmem>>, vector<3x128xf32>
    %c0_1 = arith.constant 0 : index
    %c0_2 = arith.constant 0 : index
    %1 = vector.load %arg5[%c0_1, %c0_2] : memref<3x128xf32, #tpu.memory_space<vmem>>, vector<3x128xf32>
    %2 = vector.extract_strided_slice %0 {offsets = [0, 0], sizes = [1, 128], strides = [1, 1]} : vector<3x128xf32> to vector<1x128xf32>
    %c0_3 = arith.constant 0 : index
    %3 = memref.load %arg1[%c0_3] : memref<3xf32, #tpu.memory_space<smem>>
    %4 = vector.broadcast %3 : f32 to vector<1x128xf32>
    %5 = arith.mulf %2, %4 : vector<1x128xf32>
    %c0_4 = arith.constant 0 : index
    %6 = memref.load %arg0[%c0_4] : memref<3xf32, #tpu.memory_space<smem>>
    %7 = vector.broadcast %6 : f32 to vector<1x128xf32>
    %8 = arith.addf %5, %7 : vector<1x128xf32>
    %9 = vector.extract_strided_slice %0 {offsets = [1, 0], sizes = [1, 128], strides = [1, 1]} : vector<3x128xf32> to vector<1x128xf32>
    %c1 = arith.constant 1 : index
    %10 = memref.load %arg1[%c1] : memref<3xf32, #tpu.memory_space<smem>>
    %11 = vector.broadcast %10 : f32 to vector<1x128xf32>
    %12 = arith.mulf %9, %11 : vector<1x128xf32>
    %c1_5 = arith.constant 1 : index
    %13 = memref.load %arg0[%c1_5] : memref<3xf32, #tpu.memory_space<smem>>
    %14 = vector.broadcast %13 : f32 to vector<1x128xf32>
    %15 = arith.addf %12, %14 : vector<1x128xf32>
    %16 = vector.extract_strided_slice %0 {offsets = [2, 0], sizes = [1, 128], strides = [1, 1]} : vector<3x128xf32> to vector<1x128xf32>
    %c2 = arith.constant 2 : index
    %17 = memref.load %arg1[%c2] : memref<3xf32, #tpu.memory_space<smem>>
    %18 = vector.broadcast %17 : f32 to vector<1x128xf32>
    %19 = arith.mulf %16, %18 : vector<1x128xf32>
    %c2_6 = arith.constant 2 : index
    %20 = memref.load %arg0[%c2_6] : memref<3xf32, #tpu.memory_space<smem>>
    %21 = vector.broadcast %20 : f32 to vector<1x128xf32>
    %22 = arith.addf %19, %21 : vector<1x128xf32>
    %23 = vector.extract_strided_slice %1 {offsets = [0, 0], sizes = [1, 128], strides = [1, 1]} : vector<3x128xf32> to vector<1x128xf32>
    %c0_7 = arith.constant 0 : index
    %24 = memref.load %arg3[%c0_7] : memref<3xf32, #tpu.memory_space<smem>>
    %25 = vector.broadcast %24 : f32 to vector<1x128xf32>
    %26 = arith.mulf %23, %25 : vector<1x128xf32>
    %c0_8 = arith.constant 0 : index
    %27 = memref.load %arg2[%c0_8] : memref<3xf32, #tpu.memory_space<smem>>
    %28 = vector.broadcast %27 : f32 to vector<1x128xf32>
    %29 = arith.addf %26, %28 : vector<1x128xf32>
    %30 = vector.extract_strided_slice %1 {offsets = [1, 0], sizes = [1, 128], strides = [1, 1]} : vector<3x128xf32> to vector<1x128xf32>
    %c1_9 = arith.constant 1 : index
    %31 = memref.load %arg3[%c1_9] : memref<3xf32, #tpu.memory_space<smem>>
    %32 = vector.broadcast %31 : f32 to vector<1x128xf32>
    %33 = arith.mulf %30, %32 : vector<1x128xf32>
    %c1_10 = arith.constant 1 : index
    %34 = memref.load %arg2[%c1_10] : memref<3xf32, #tpu.memory_space<smem>>
    %35 = vector.broadcast %34 : f32 to vector<1x128xf32>
    %36 = arith.addf %33, %35 : vector<1x128xf32>
    %37 = vector.extract_strided_slice %1 {offsets = [2, 0], sizes = [1, 128], strides = [1, 1]} : vector<3x128xf32> to vector<1x128xf32>
    %c2_11 = arith.constant 2 : index
    %38 = memref.load %arg3[%c2_11] : memref<3xf32, #tpu.memory_space<smem>>
    %39 = vector.broadcast %38 : f32 to vector<1x128xf32>
    %40 = arith.mulf %37, %39 : vector<1x128xf32>
    %c2_12 = arith.constant 2 : index
    %41 = memref.load %arg2[%c2_12] : memref<3xf32, #tpu.memory_space<smem>>
    %42 = vector.broadcast %41 : f32 to vector<1x128xf32>
    %43 = arith.addf %40, %42 : vector<1x128xf32>
    %44 = arith.subf %15, %22 : vector<1x128xf32>
    %cst = arith.constant 0.000000e+00 : f32
    %45 = vector.broadcast %cst : f32 to vector<1x128xf32>
    %46 = arith.maximumf %44, %45 : vector<1x128xf32>
    %47 = arith.fptosi %46 : vector<1x128xf32> to vector<1x128xi32>
    %48 = arith.addf %15, %22 : vector<1x128xf32>
    %cst_13 = arith.constant 1.600000e+01 : f32
    %49 = vector.broadcast %cst_13 : f32 to vector<1x128xf32>
    %50 = arith.minimumf %48, %49 : vector<1x128xf32>
    %51 = arith.fptosi %50 : vector<1x128xf32> to vector<1x128xi32>
    %52 = arith.subf %8, %22 : vector<1x128xf32>
    %cst_14 = arith.constant 0.000000e+00 : f32
    %53 = vector.broadcast %cst_14 : f32 to vector<1x128xf32>
    %54 = arith.maximumf %52, %53 : vector<1x128xf32>
    %55 = arith.fptosi %54 : vector<1x128xf32> to vector<1x128xi32>
    %56 = arith.addf %8, %22 : vector<1x128xf32>
    %cst_15 = arith.constant 1.600000e+01 : f32
    %57 = vector.broadcast %cst_15 : f32 to vector<1x128xf32>
    %58 = arith.minimumf %56, %57 : vector<1x128xf32>
    %59 = arith.fptosi %58 : vector<1x128xf32> to vector<1x128xi32>
    %60 = arith.subf %36, %43 : vector<1x128xf32>
    %cst_16 = arith.constant 0.000000e+00 : f32
    %61 = vector.broadcast %cst_16 : f32 to vector<1x128xf32>
    %62 = arith.maximumf %60, %61 : vector<1x128xf32>
    %63 = arith.fptosi %62 : vector<1x128xf32> to vector<1x128xi32>
    %64 = arith.addf %36, %43 : vector<1x128xf32>
    %cst_17 = arith.constant 1.600000e+01 : f32
    %65 = vector.broadcast %cst_17 : f32 to vector<1x128xf32>
    %66 = arith.minimumf %64, %65 : vector<1x128xf32>
    %67 = arith.fptosi %66 : vector<1x128xf32> to vector<1x128xi32>
    %68 = arith.subf %29, %43 : vector<1x128xf32>
    %cst_18 = arith.constant 0.000000e+00 : f32
    %69 = vector.broadcast %cst_18 : f32 to vector<1x128xf32>
    %70 = arith.maximumf %68, %69 : vector<1x128xf32>
    %71 = arith.fptosi %70 : vector<1x128xf32> to vector<1x128xi32>
    %72 = arith.addf %29, %43 : vector<1x128xf32>
    %cst_19 = arith.constant 1.600000e+01 : f32
    %73 = vector.broadcast %cst_19 : f32 to vector<1x128xf32>
    %74 = arith.minimumf %72, %73 : vector<1x128xf32>
    %75 = arith.fptosi %74 : vector<1x128xf32> to vector<1x128xi32>
    %76 = arith.subi %51, %47 : vector<1x128xi32>
    %c0_i32 = arith.constant 0 : i32
    %77 = vector.broadcast %c0_i32 : i32 to vector<1x128xi32>
    %78 = arith.maxsi %76, %77 : vector<1x128xi32>
    %79 = arith.subi %67, %63 : vector<1x128xi32>
    %c0_i32_20 = arith.constant 0 : i32
    %80 = vector.broadcast %c0_i32_20 : i32 to vector<1x128xi32>
    %81 = arith.maxsi %79, %80 : vector<1x128xi32>
    %82 = arith.minsi %51, %67 : vector<1x128xi32>
    %83 = arith.maxsi %47, %63 : vector<1x128xi32>
    %84 = arith.subi %82, %83 : vector<1x128xi32>
    %c0_i32_21 = arith.constant 0 : i32
    %85 = vector.broadcast %c0_i32_21 : i32 to vector<1x128xi32>
    %86 = arith.maxsi %84, %85 : vector<1x128xi32>
    %87 = arith.addi %78, %81 : vector<1x128xi32>
    %88 = arith.subi %87, %86 : vector<1x128xi32>
    %89 = arith.sitofp %86 : vector<1x128xi32> to vector<1x128xf32>
    %90 = arith.sitofp %88 : vector<1x128xi32> to vector<1x128xf32>
    %91 = arith.subi %59, %55 : vector<1x128xi32>
    %c0_i32_22 = arith.constant 0 : i32
    %92 = vector.broadcast %c0_i32_22 : i32 to vector<1x128xi32>
    %93 = arith.maxsi %91, %92 : vector<1x128xi32>
    %94 = arith.subi %75, %71 : vector<1x128xi32>
    %c0_i32_23 = arith.constant 0 : i32
    %95 = vector.broadcast %c0_i32_23 : i32 to vector<1x128xi32>
    %96 = arith.maxsi %94, %95 : vector<1x128xi32>
    %97 = arith.minsi %59, %75 : vector<1x128xi32>
    %98 = arith.maxsi %55, %71 : vector<1x128xi32>
    %99 = arith.subi %97, %98 : vector<1x128xi32>
    %c0_i32_24 = arith.constant 0 : i32
    %100 = vector.broadcast %c0_i32_24 : i32 to vector<1x128xi32>
    %101 = arith.maxsi %99, %100 : vector<1x128xi32>
    %102 = arith.addi %93, %96 : vector<1x128xi32>
    %103 = arith.subi %102, %101 : vector<1x128xi32>
    %104 = arith.sitofp %101 : vector<1x128xi32> to vector<1x128xf32>
    %105 = arith.sitofp %103 : vector<1x128xi32> to vector<1x128xf32>
    %106 = tpu.iota {dimensions = array<i32: 1>} : vector<1x128xi32>
    %c8_i32 = arith.constant 8 : i32
    %107 = vector.broadcast %c8_i32 : i32 to vector<1x128xi32>
    %108 = arith.cmpi slt, %106, %107 : vector<1x128xi32>
    %cst_25 = arith.constant 0.000000e+00 : f32
    %109 = vector.broadcast %cst_25 : f32 to vector<1x128xf32>
    %110 = arith.select %108, %89, %109 : vector<1x128xi1>, vector<1x128xf32>
    %111 = arith.select %108, %104, %109 : vector<1x128xi1>, vector<1x128xf32>
    %112 = arith.select %108, %90, %109 : vector<1x128xi1>, vector<1x128xf32>
    %113 = arith.select %108, %105, %109 : vector<1x128xi1>, vector<1x128xf32>
    %114 = tpu.concatenate %110, %111, %112, %113, %109, %109, %109, %109 in 0 : vector<1x128xf32>, vector<1x128xf32>, vector<1x128xf32>, vector<1x128xf32>, vector<1x128xf32>, vector<1x128xf32>, vector<1x128xf32>, vector<1x128xf32> -> vector<8x128xf32>
    %115 = tpu.iota {dimensions = array<i32: 0>} : vector<128x128xi32>
    %116 = tpu.iota {dimensions = array<i32: 1>} : vector<128x128xi32>
    %117 = arith.cmpi sle, %115, %116 : vector<128x128xi32>
    %cst_26 = arith.constant 1.000000e+00 : f32
    %cst_27 = arith.constant 0.000000e+00 : f32
    %118 = vector.broadcast %cst_26 : f32 to vector<128x128xf32>
    %119 = vector.broadcast %cst_27 : f32 to vector<128x128xf32>
    %120 = arith.select %117, %118, %119 : vector<128x128xi1>, vector<128x128xf32>
    %cst_28 = arith.constant dense<0.000000e+00> : vector<8x128xf32>
    %121 = tpu.matmul %114, %120, %cst_28 {dimension_numbers = #tpu.dot_dimension_numbers<[1], [0], [0], [1], [0, 0, 1, 1], [], []>} : vector<8x128xf32>, vector<128x128xf32>, vector<8x128xf32> -> vector<8x128xf32>
    %122 = vector.extract_strided_slice %121 {offsets = [0, 0], sizes = [1, 128], strides = [1, 1]} : vector<8x128xf32> to vector<1x128xf32>
    %123 = vector.extract_strided_slice %121 {offsets = [1, 0], sizes = [1, 128], strides = [1, 1]} : vector<8x128xf32> to vector<1x128xf32>
    %124 = vector.extract_strided_slice %121 {offsets = [2, 0], sizes = [1, 128], strides = [1, 1]} : vector<8x128xf32> to vector<1x128xf32>
    %125 = vector.extract_strided_slice %121 {offsets = [3, 0], sizes = [1, 128], strides = [1, 1]} : vector<8x128xf32> to vector<1x128xf32>
    %126 = arith.mulf %122, %123 : vector<1x128xf32>
    %127 = arith.mulf %124, %125 : vector<1x128xf32>
    %128 = tpu.reciprocal %127 : vector<1x128xf32> -> vector<1x128xf32>
    %129 = arith.mulf %126, %128 : vector<1x128xf32>
    %130 = arith.select %108, %129, %109 : vector<1x128xi1>, vector<1x128xf32>
    %cst_29 = arith.constant dense<0.000000e+00> : vector<1xf32>
    %131 = vector.multi_reduction <add>, %130, %cst_29 [1] : vector<1x128xf32> to vector<1xf32>
    %132 = vector.shape_cast %131 : vector<1xf32> to vector<1x1xf32>
    %cst_30 = arith.constant 1.250000e-01 : f32
    %133 = vector.broadcast %cst_30 : f32 to vector<1x1xf32>
    %134 = arith.mulf %132, %133 : vector<1x1xf32>
    %135 = arith.subf %0, %1 : vector<3x128xf32>
    %136 = arith.mulf %135, %135 : vector<3x128xf32>
    %cst_31 = arith.constant dense<0.000000e+00> : vector<128xf32>
    %137 = vector.multi_reduction <add>, %136, %cst_31 [0] : vector<3x128xf32> to vector<128xf32>
    %138 = vector.shape_cast %137 : vector<128xf32> to vector<1x128xf32>
    %139 = arith.select %108, %138, %109 : vector<1x128xi1>, vector<1x128xf32>
    %cst_32 = arith.constant dense<0.000000e+00> : vector<1xf32>
    %140 = vector.multi_reduction <add>, %139, %cst_32 [1] : vector<1x128xf32> to vector<1xf32>
    %141 = vector.shape_cast %140 : vector<1xf32> to vector<1x1xf32>
    %cst_33 = arith.constant 1.250000e-01 : f32
    %142 = vector.broadcast %cst_33 : f32 to vector<1x1xf32>
    %143 = arith.mulf %141, %142 : vector<1x1xf32>
    %cst_34 = arith.constant 1.000000e+00 : f32
    %144 = vector.broadcast %cst_34 : f32 to vector<1x1xf32>
    %145 = arith.subf %144, %134 : vector<1x1xf32>
    %146 = arith.addf %143, %145 : vector<1x1xf32>
    %c0_35 = arith.constant 0 : index
    %c0_36 = arith.constant 0 : index
    %147 = vector.load %arg6[%c0_35, %c0_36] : memref<1x2xf32, #tpu.memory_space<vmem>>, vector<1x1xf32>
    tpu.vector_store %arg6[%c0_35, %c0_36], %146 {strides = array<i32>} : memref<1x2xf32, #tpu.memory_space<vmem>>, vector<1x1xf32>,
    %c0_37 = arith.constant 0 : index
    %c1_38 = arith.constant 1 : index
    %148 = vector.load %arg6[%c0_37, %c1_38] : memref<1x2xf32, #tpu.memory_space<vmem>>, vector<1x1xf32>
    tpu.vector_store %arg6[%c0_37, %c1_38], %134 {strides = array<i32>} : memref<1x2xf32, #tpu.memory_space<vmem>>, vector<1x1xf32>,
    return
  }
}

</mosaic_0001>

<bundles_post_ra>
// kernel: tpu_custom_call.1
= control target key start
LH: loop header
LB: loop body
LE: loop exit
PB: predicated region body
PF: predicated region fallthrough
CT: control target
= control target key end

     0   :  { %11 = vsyncpa [#allocation4], 0  ;;  %s775_s0 = inlined_call_operand.hbm [shape: f32[3], index: 0, kind: input, shape index: {}]   ;;  %s776_s1 = inlined_call_operand.vmem [shape: f32[3], index: 1, kind: input, shape index: {}]   ;;  %s777_s2 = inlined_call_operand.hbm [shape: f32[3], index: 2, kind: input, shape index: {}]   ;;  %s778_s3 = inlined_call_operand.hbm [shape: f32[3], index: 3, kind: input, shape index: {}]   ;;  %s779_s4 = inlined_call_operand.vmem [shape: f32[3,128], index: 4, kind: input, shape index: {}]   ;;  %s780_s5 = inlined_call_operand.vmem [shape: f32[3,128], index: 5, kind: input, shape index: {}]   ;;  %s781_s6 = inlined_call_operand.hbm [shape: f32[1,2], index: 6, kind: output, shape index: {}]  }
   0x1   :  { %12 = vsyncpa [#allocation5], 0 }
   0x2   :  { %13 = vsyncpa [#allocation8], 0 }
   0x3   :  { %14 = vsyncpa [#allocation3], 0  ;;  %s541_s21 = smov [#allocation7]   ;;  %s542_s24 = smov [#allocation2]  }
   0x4   :  { %40 = dma.hbm_to_smem %s777_s2, 16, %s541_s21, [#allocation8]  }
   0x5   :  { %22 = dma.hbm_to_smem %s775_s0, 16, %s542_s24, [#allocation4]  }
   0x6   :  { %s29_s29 = sshll.u32 %s776_s1, 4  ;;  %s30_s29 = int_to_ptr.vmem [resolvable:$true] %s29_s29 }
   0x7   :  { %s493_s30 = scalar_lea.vmem %s30_s29, 16  ;;  %p498_p1 = scmp.lt.s32.totalorder %s30_s29, %s30_s29 }
   0x8   :  { %p494_p0 = scmp.ne.s32.totalorder %s30_s29, %s493_s30  ;;  %p499_p2 = scmp.lt.s32.totalorder %s493_s30, %s493_s30 }
   0xa   :  { %p500_p3 = por %p499_p2, %p498_p1 }
   0xc   :  { %p501_p4 = pnand %p500_p3, %p494_p0 }
   0xe   :  { %504 = shalt.err (!%p501_p4)
}
   0xf   :  { %s543_s7 = smov [#allocation6]   ;;  %s544_s2 = smov [#allocation9]  }
  0x10   :  { %32 = dma.vmem_to_smem %s30_s29, 16, %s543_s7, [#allocation5]  }
  0x11   :  { %48 = dma.hbm_to_smem %s778_s3, 16, %s544_s2, [#allocation8]  }
  0x12   :  { %533 = dma.done.wait [#allocation4], 16  }
  0x13   :  { %534 = vsyncadd [#allocation4], 4294967280 }
  0x14   :  { %535 = dma.done.wait [#allocation5], 16  }
  0x15   :  { %536 = vsyncadd [#allocation5], 4294967280 }
  0x16   :  { %537 = dma.done.wait [#allocation8], 32  }
  0x17   :  { %538 = vsyncadd [#allocation8], 4294967264 }
  0x18   :  { %65 = sfence }
  0x19   :  { %v172_v0 = vlaneseq  ;;  %v545_v1 = vmov 0.0   ;;  %vm546_vm0 = vmmov 0   ;;  %s598_s0 = sld [smem:[#allocation6]]  ;;  %v547_v8 = vmov 1.0   ;;  %v644_v13 = vld [vmem:[%s779_s4] sm:$0x7] }
  0x1a   :  { %416 = vmatprep.subr.mxu0 %v545_v1  ;;  %448 = vmatprep.mubr.msk.f32.mxu0 %vm546_vm0, %v545_v1  ;;  %s604_s1 = sld [smem:[#allocation2]]  ;;  %v677_v28 = vld [vmem:[%s780_s5] sm:$0x7]  ;;  %s548_s5 = smov [#allocation10]  }
  0x1b   :  { %v600_v2 = vand.u32 127, %v172_v0  ;;  %v602_v3 = vshrl.u32 %v172_v0, 7  ;;  %s606_s3 = sld [smem:[#allocation6 + $0x1]]  ;;  %s363_s22 = sshll.u32 %s548_s5, 4  ;;  %s364_s22 = int_to_ptr.vmem [resolvable:$true] %s363_s22 }
  0x1c   :  { %s611_s10 = sld [smem:[#allocation2 + $0x1]]  ;;  %s513_s23 = scalar_lea.vmem %s364_s22, 16 }
  0x1d   :  { %v221_v4 = vadd.s32 120, %v602_v3  ;;  %v220_v5 = vadd.s32 112, %v602_v3  ;;  %v219_v6 = vadd.s32 104, %v602_v3  ;;  %s613_s11 = sld [smem:[#allocation6 + $0x2]]  ;;  %v218_v7 = vadd.s32 96, %v602_v3  ;;  %p514_p5 = scmp.ne.s32.totalorder %s364_s22, %s513_s23 }
  0x1e   :  { %s618_s12 = sld [smem:[#allocation2 + $0x2]]  ;;  %v217_v9 = vadd.s32 88, %v602_v3  ;;  %v216_v10 = vadd.s32 80, %v602_v3  ;;  %v215_v11 = vadd.s32 72, %v602_v3  ;;  %v214_v12 = vadd.s32 64, %v602_v3  ;;  %s517_s24 = scalar_lea.vmem %s364_s22, 32 }
  0x1f   :  { %vm237_vm1 = vcmp.le.s32.totalorder %v221_v4, %v600_v2  ;;  %vm236_vm2 = vcmp.le.s32.totalorder %v220_v5, %v600_v2  ;;  %s623_s13 = sld [smem:[#allocation9]]  ;;  %vm235_vm3 = vcmp.le.s32.totalorder %v219_v6, %v600_v2  ;;  %vm234_vm4 = vcmp.le.s32.totalorder %v218_v7, %v600_v2  ;;  %p518_p6 = scmp.lt.s32.totalorder %s364_s22, %s364_s22 }
  0x20   :  { %417 = vmatpush3.msk.msra.mxu0 %vm237_vm1, %v547_v8  ;;  %s629_s14 = sld [smem:[#allocation7]]  ;;  %vm233_vm5 = vcmp.le.s32.totalorder %v217_v9, %v600_v2  ;;  %vm232_vm6 = vcmp.le.s32.totalorder %v216_v10, %v600_v2  ;;  %v69_v14 = vstv %s598_s0  ;;  %vm231_vm7 = vcmp.le.s32.totalorder %v215_v11, %v600_v2  ;;  %p519_p7 = scmp.lt.s32.totalorder %s517_s24, %s513_s23 }
  0x21   :  { %418 = vmatprep.subr.mxu0 %v545_v1  ;;  %s632_s15 = sld [smem:[#allocation9 + $0x1]]  ;;  %vm230_vm8 = vcmp.le.s32.totalorder %v214_v12, %v600_v2  ;;  %v70_v15 = vmul.f32 %v69_v14, %v644_v13  ;;  %v75_v16 = vstv %s606_s3  ;;  %v213_v21 = vadd.s32 56, %v602_v3 }
  0x22   :  { %419 = vmatpush3.msk.msra.mxu0 %vm236_vm2, %v547_v8  ;;  %s636_s16 = sld [smem:[#allocation7 + $0x1]]  ;;  %v76_v17 = vmul.f32 %v75_v16, %v644_v13  ;;  %v78_v18 = vstv %s611_s10  ;;  %v72_v22 = vstv %s604_s1  ;;  %v212_v25 = vadd.s32 48, %v602_v3  ;;  %p520_p8 = por %p519_p7, %p518_p6 }
  0x23   :  { %420 = vmatprep.subr.mxu0 %v545_v1  ;;  %s647_s19 = sld [smem:[#allocation9 + $0x2]]  ;;  %v81_v19 = vstv %s613_s11  ;;  %v211_v26 = vadd.s32 40, %v602_v3  ;;  %v672_v27 = vadd.s32 32, %v602_v3  ;;  %v682_v30 = vadd.s32 24, %v602_v3 }
  0x24   :  { %421 = vmatpush3.msk.msra.mxu0 %vm235_vm3, %v547_v8  ;;  %s654_s20 = sld [smem:[#allocation7 + $0x2]]  ;;  %v84_v20 = vstv %s618_s12  ;;  %v82_v23 = vmul.f32 %v81_v19, %v644_v13  ;;  %v79_v31 = vadd.f32 %v78_v18, %v76_v17  ;;  %v73_v34 = vadd.f32 %v72_v22, %v70_v15  ;;  %p521_p9 = pnand %p520_p8, %p514_p5 }
  0x25   :  { %422 = vmatprep.subr.mxu0 %v545_v1  ;;  %v87_v24 = vstv %s623_s13  ;;  %vm229_vm9 = vcmp.le.s32.totalorder %v213_v21, %v600_v2  ;;  %v700_v42 = vadd.s32 16, %v602_v3  ;;  %v703_v43 = vadd.s32 8, %v602_v3 }
  0x26   :  { %423 = vmatpush3.msk.msra.mxu0 %vm234_vm4, %v547_v8  ;;  %v85_v32 = vadd.f32 %v84_v20, %v82_v23  ;;  %v88_v35 = vmul.f32 %v87_v24, %v677_v28  ;;  %v90_v38 = vstv %s629_s14  ;;  %vm228_vm10 = vcmp.le.s32.totalorder %v212_v25, %v600_v2 }
  0x27   :  { %424 = vmatprep.subr.mxu0 %v545_v1  ;;  %v93_v29 = vstv %s632_s15  ;;  %vm227_vm11 = vcmp.le.s32.totalorder %v211_v26, %v600_v2  ;;  %vm226_vm12 = vcmp.le.s32.totalorder %v672_v27, %v600_v2  ;;  %vm222_vm13 = vcmp.le.s32.totalorder %v602_v3, %v600_v2 }
  0x28   :  { %425 = vmatpush3.msk.msra.mxu0 %vm233_vm5, %v547_v8  ;;  %v94_v33 = vmul.f32 %v93_v29, %v677_v28  ;;  %v96_v36 = vstv %s636_s16  ;;  %v105_v41 = vrot.slane %v85_v32, 1  ;;  %v113_v44 = vrot.slane %v85_v32, 2 }
  0x29   :  { %426 = vmatprep.subr.mxu0 %v545_v1  ;;  %v99_v37 = vstv %s647_s19  ;;  %v91_v49 = vadd.f32 %v90_v38, %v88_v35  ;;  %vm225_vm14 = vcmp.le.s32.totalorder %v682_v30, %v600_v2  ;;  %vm224_vm15 = vcmp.le.s32.totalorder %v700_v42, %v600_v2 }
  0x2a   :  { %427 = vmatpush3.msk.msra.mxu0 %vm232_vm6, %v547_v8  ;;  %v100_v39 = vmul.f32 %v99_v37, %v677_v28  ;;  %v102_v40 = vstv %s654_s20  ;;  %v97_v45 = vadd.f32 %v96_v36, %v94_v33  ;;  %v107_v47 = vsub.f32 %v79_v31, %v105_v41 }
  0x2b   :  { %428 = vmatprep.subr.mxu0 %v545_v1  ;;  %v110_v48 = vadd.f32 %v105_v41, %v79_v31  ;;  %v115_v50 = vsub.f32 %v73_v34, %v113_v44  ;;  %v118_v51 = vadd.f32 %v113_v44, %v73_v34  ;;  %vm223_vm0 = vcmp.le.s32.totalorder %v703_v43, %v600_v2 }
  0x2c   :  { %429 = vmatpush3.msk.msra.mxu0 %vm231_vm7, %v547_v8  ;;  %v103_v46 = vadd.f32 %v102_v40, %v100_v39  ;;  %v108_v52 = vmax.f32 %v107_v47, 0.0 }
  0x2d   :  { %430 = vmatprep.subr.mxu0 %v545_v1  ;;  %v111_v53 = vmin.f32 %v110_v48, 16.0  ;;  %v116_v56 = vmax.f32 %v115_v50, 0.0  ;;  %v119_v57 = vmin.f32 %v118_v51, 16.0 }
  0x2e   :  { %431 = vmatpush3.msk.msra.mxu0 %vm230_vm8, %v547_v8  ;;  %v122_v54 = vrot.slane %v103_v46, 1  ;;  %v130_v55 = vrot.slane %v103_v46, 2  ;;  %v451_v58 = vtrunc.f32 %v108_v52 }
  0x2f   :  { %432 = vmatprep.subr.mxu0 %v545_v1  ;;  %v453_v59 = vtrunc.f32 %v111_v53  ;;  %v455_v62 = vtrunc.f32 %v116_v56  ;;  %v457_v63 = vtrunc.f32 %v119_v57 }
  0x30   :  { %433 = vmatpush3.msk.msra.mxu0 %vm229_vm9, %v547_v8  ;;  %v124_v60 = vsub.f32 %v97_v45, %v122_v54  ;;  %v127_v61 = vadd.f32 %v122_v54, %v97_v45  ;;  %v132_v0 = vsub.f32 %v91_v49, %v130_v55  ;;  %v135_v4 = vadd.f32 %v130_v55, %v91_v49 }
  0x31   :  { %434 = vmatprep.subr.mxu0 %v545_v1  ;;  %v452_v5 = vcvt.f32.s32 %v451_v58  ;;  %v454_v6 = vcvt.f32.s32 %v453_v59  ;;  %v456_v10 = vcvt.f32.s32 %v455_v62  ;;  %v458_v11 = vcvt.f32.s32 %v457_v63 }
  0x32   :  { %435 = vmatpush3.msk.msra.mxu0 %vm228_vm10, %v547_v8  ;;  %v125_v7 = vmax.f32 %v124_v60, 0.0  ;;  %v128_v9 = vmin.f32 %v127_v61, 16.0  ;;  %v133_v12 = vmax.f32 %v132_v0, 0.0  ;;  %v136_v14 = vmin.f32 %v135_v4, 16.0 }
  0x33   :  { %436 = vmatprep.subr.mxu0 %v545_v1  ;;  %v138_v17 = vsub.s32 %v454_v6, %v452_v5  ;;  %v155_v20 = vsub.s32 %v458_v11, %v456_v10  ;;  %vm174_vm10 = vcmp.lt.s32.totalorder %v600_v2, 8  ;;  %v338_v59 = vsub.f32 %v644_v13, %v677_v28 }
  0x34   :  { %437 = vmatpush3.msk.msra.mxu0 %vm227_vm11, %v547_v8  ;;  %v459_v15 = vtrunc.f32 %v125_v7  ;;  %v461_v16 = vtrunc.f32 %v128_v9  ;;  %v463_v18 = vtrunc.f32 %v133_v12  ;;  %v465_v19 = vtrunc.f32 %v136_v14 }
  0x35   :  { %438 = vmatprep.subr.mxu0 %v545_v1  ;;  %vm139_vm1 = vcmp.gt.s32.totalorder %v138_v17, 0  ;;  %vm156_vm2 = vcmp.gt.s32.totalorder %v155_v20, 0  ;;  %v339_v60 = vmul.f32 %v338_v59, %v338_v59 }
  0x36   :  { %439 = vmatpush3.msk.msra.mxu0 %vm226_vm12, %v547_v8  ;;  %v460_v21 = vcvt.f32.s32 %v459_v15  ;;  %v462_v22 = vcvt.f32.s32 %v461_v16  ;;  %v464_v23 = vcvt.f32.s32 %v463_v18  ;;  %v466_v24 = vcvt.f32.s32 %v465_v19 }
  0x37   :  { %440 = vmatprep.subr.mxu0 %v545_v1  ;;  %v140_v25 = vsel %vm139_vm1, %v138_v17, 0  ;;  %v157_v27 = vsel %vm156_vm2, %v155_v20, 0  ;;  %vm191_vm12 = vcmask 1040384   ;;  %vm201_vm1 = vcmask 1045504  }
  0x38   :  { %441 = vmatpush3.msk.msra.mxu0 %vm225_vm14, %v547_v8  ;;  %v141_v26 = vsub.s32 %v462_v22, %v460_v21  ;;  %vm144_vm3 = vcmp.lt.s32.totalorder %v454_v6, %v462_v22  ;;  %vm146_vm4 = vcmp.gt.s32.totalorder %v452_v5, %v460_v21  ;;  %v158_v31 = vsub.s32 %v466_v24, %v464_v23 }
  0x39   :  { %442 = vmatprep.subr.mxu0 %v545_v1  ;;  %v145_v29 = vsel %vm144_vm3, %v454_v6, %v462_v22  ;;  %v147_v30 = vsel %vm146_vm4, %v452_v5, %v460_v21  ;;  %vm161_vm5 = vcmp.lt.s32.totalorder %v458_v11, %v466_v24  ;;  %vm163_vm7 = vcmp.gt.s32.totalorder %v456_v10, %v464_v23 }
  0x3a   :  { %443 = vmatpush3.msk.msra.mxu0 %vm224_vm15, %v547_v8  ;;  %vm142_vm6 = vcmp.gt.s32.totalorder %v141_v26, 0  ;;  %v148_v32 = vsub.s32 %v145_v29, %v147_v30  ;;  %v162_v33 = vsel %vm161_vm5, %v458_v11, %v466_v24  ;;  %vm159_vm8 = vcmp.gt.s32.totalorder %v158_v31, 0 }
  0x3b   :  { %444 = vmatprep.subr.mxu0 %v545_v1  ;;  %v143_v34 = vsel %vm142_vm6, %v141_v26, 0  ;;  %v164_v35 = vsel %vm163_vm7, %v456_v10, %v464_v23  ;;  %v160_v37 = vsel %vm159_vm8, %v158_v31, 0  ;;  %vm195_vm14 = vcmask 1042432  }
  0x3c   :  { %445 = vmatpush3.msk.msra.mxu0 %vm223_vm0, %v547_v8  ;;  %vm149_vm9 = vcmp.gt.s32.totalorder %v148_v32, 0  ;;  %v151_v36 = vadd.s32 %v143_v34, %v140_v25  ;;  %v165_v38 = vsub.s32 %v162_v33, %v164_v35  ;;  %v168_v40 = vadd.s32 %v160_v37, %v157_v27 }
  0x3d   :  { %446 = vmatprep.subr.mxu0 %v545_v1  ;;  %v150_v39 = vsel %vm149_vm9, %v148_v32, 0  ;;  %vm197_vm15 = vcmask 1043456   ;;  %vm199_vm0 = vcmask 1044480   ;;  %vm203_vm2 = vcmask 1046528  }
  0x3e   :  { %447 = vmatpush3.msk.msra.mxu0 %vm222_vm13, %v547_v8  ;;  %v152_v41 = vsub.s32 %v151_v36, %v150_v39  ;;  %v153_v42 = vcvt.s32.f32 %v150_v39  ;;  %vm166_vm11 = vcmp.gt.s32.totalorder %v165_v38, 0  ;;  %vm193_vm13 = vcmask 1041408  }
  0x3f   :  { %v167_v43 = vsel %vm166_vm11, %v165_v38, 0  ;;  %v340_v61 = vsel %vm195_vm14, %v339_v60, 0.0  ;;  %vm353_vm3 = vcmask 0   ;;  %vm355_vm4 = vcmask 8200  }
  0x40   :  { %v154_v44 = vcvt.s32.f32 %v152_v41  ;;  %v169_v45 = vsub.s32 %v168_v40, %v167_v43  ;;  %v170_v1 = vcvt.s32.f32 %v167_v43  ;;  %v175_v46 = vsel %vm174_vm10, %v153_v42, 0.0 }
  0x41   :  { %v180_v47 = vrot.slane %v175_v46, 1  ;;  %v341_v4 = vrot.slane %v340_v61, 4 }
  0x42   :  { %v171_v48 = vcvt.s32.f32 %v169_v45  ;;  %v176_v3 = vsel %vm174_vm10, %v170_v1, 0.0  ;;  %v177_v8 = vsel %vm174_vm10, %v154_v44, 0.0 }
  0x43   :  { %v183_v49 = vrot.slane %v176_v3, 7  ;;  %v186_v50 = vrot.slane %v177_v8, 7  ;;  %v342_v6 = vadd.f32 %v341_v4, %v340_v61 }
  0x44   :  { %v178_v51 = vsel %vm174_vm10, %v171_v48, 0.0 }
  0x45   :  { %v189_v52 = vrot.slane %v178_v51, 5  ;;  %v192_v53 = vsel %vm191_vm12, %v180_v47, %v183_v49  ;;  %v343_v7 = vrot.slane %v342_v6, 2 }
  0x46   :  { %v194_v54 = vsel %vm193_vm13, %v192_v53, %v186_v50 }
  0x47   :  { %v196_v55 = vsel %vm195_vm14, %v194_v54, %v189_v52  ;;  %v344_v9 = vadd.f32 %v343_v7, %v342_v6 }
  0x48   :  { %v198_v56 = vsel %vm197_vm15, %v196_v55, 0.0 }
  0x49   :  { %v200_v57 = vsel %vm199_vm0, %v198_v56, 0.0  ;;  %v345_v11 = vrot.slane %v344_v9, 1 }
  0x4a   :  { %v202_v58 = vsel %vm201_vm1, %v200_v57, 0.0 }
  0x4b   :  { %449 = vmatmul.mubr.msk.f32.vlgmr.msra.gmra.mxu0 %vm203_vm2, %v202_v58  ;;  %v346_v15 = vadd.f32 %v345_v11, %v344_v9 }
  0x4d   :  { %v347_v28 = vsel %vm174_vm10, %v346_v15, 0.0 }
 0x10b   :  { %v320_v62 = vpop.f32.mrf.mxu0 }
 0x10c   :  { %v325_v63 = vrot.slane %v320_v62, 1 }
 0x10d   :  { %v450_v0 = vpop.f32.mrf.mxu0 }
 0x10e   :  { %v327_v5 = vmul.f32 %v325_v63, %v320_v62 }
 0x110   :  { %475 = vrcp.f32 %v327_v5 }
 0x11d   :  { %v476_v10 = vpop.eup %475 }
 0x11e   :  { %v330_v12 = vrot.slane %v476_v10, 2 }
 0x120   :  { %v332_v14 = vmul.f32 %v330_v12, %v327_v5 }
 0x122   :  { %v333_v16 = vsel %vm174_vm10, %v332_v14, 0.0 }
 0x123   :  { %v334_v13 = vsel %vm191_vm12, %v333_v16, 0.0 }
 0x124   :  { %335 = vadd.xlane.f32.xlu0 %v334_v13 }
 0x128   :  { %348 = vadd.xlane.f32.xlu0 %v347_v28 }
 0x1ad   :  { %v336_v17 = vpop.xlane.xlu0 %335 }
 0x1ae   :  { %v337_v18 = vmul.f32 0.125, %v336_v17 }
 0x1b0   :  { %v351_v20 = vsub.f32 1.0, %v337_v18 }
 0x1b1   :  { %v349_v19 = vpop.xlane.xlu0 %348 }
 0x1b2   :  { %v350_v21 = vmul.f32 0.125, %v349_v19 }
 0x1b4   :  { %v352_v22 = vadd.f32 %v351_v20, %v350_v21 }
 0x1b6   :  { %354 = vst.msk [vmem:[#allocation10] sm:$0x1] %vm353_vm3, %v352_v22 }
 0x1b7   :  { %356 = vst.msk [vmem:[#allocation10] sm:$0x1] %vm355_vm4, %v337_v18 }
 0x1b8   :  { %524 = shalt.err (!%p521_p9)
}
 0x1b9   :  { %366 = dma.vmem_to_hbm [thread:$0]  %s364_s22, 16, %s781_s6, [#allocation3]  }
 0x1ba   :  { %539 = dma.done.wait [#allocation3], 16  }
 0x1bb   :  { %540 = vsyncadd [#allocation3], 4294967280 }
 0x1bc   :  { %370 = vsyncpa [#allocation3], 1 }
 0x1bd   :  { %371 = vsyncpa [#allocation4], 1 }
 0x1be   :  { %372 = vsyncpa [#allocation8], 1 }
 0x1bf   :  { %373 = vsyncpa [#allocation5], 1 }

</bundles_post_ra>
